<compile_context>
chip_gen: v7x
topology: tpu7x:2x2x1
jax: 0.10.0
libtpu: 0.0.40
codegen_flags: <defaults>
</compile_context>

<pallas_src>
import functools

import jax
import jax.numpy as jnp
from jax import lax
from jax.experimental import pallas as pl
from jax.experimental.pallas import tpu as pltpu


# TODO(synk): TSAMLayer's definition is not provided in the reference source;
# it is treated as an identity pass-through, so emotion_embs / emotion_reps /
# adj_b / adj_same_b / adj_diff_b are unused and only the TSAM-level math
# (interaction block + concat) is reproduced.
_NEG_BIG = -1e30


def _tsam_fused_kernel(g_ref, e_ref, w1_ref, w2_ref, bias_ref, out_ref, *,
                       num_layers, feat_dim):
    """Fused TSAM forward: all layers + final concat, whole batch in one block.

    g_ref, e_ref : (B*L, D) VMEM       (gat / emo streams, flattened batch)
    w1_ref, w2_ref : (D, D) VMEM       (affine1 / affine2)
    bias_ref : (B*L, B*L) f32 VMEM     (0 within a batch element, -1e30 across)
    out_ref : (B*L, 2*D) VMEM          (concat([G, E], axis=-1))
    """
    g = g_ref[...].astype(jnp.float32)          # (BL, D)
    e = e_ref[...].astype(jnp.float32)          # (BL, D)
    w1 = w1_ref[...].astype(jnp.float32)        # (D, D)
    w2 = w2_ref[...].astype(jnp.float32)        # (D, D)
    bias = bias_ref[...]                        # (BL, BL) f32

    # Contract the last axis of both operands: s[i, j] = lhs[i, :] . rhs[j, :]
    contract_last = (((1,), (1,)), ((), ()))

    for _ in range(num_layers):
        # TSAMLayer is identity; interaction block follows.
        # Projections over all B*L rows at once (one MXU push each).
        gw = jnp.dot(g, w1, preferred_element_type=jnp.float32)        # (BL, D)
        ew = jnp.dot(e, w2, preferred_element_type=jnp.float32)        # (BL, D)

        # Scores: last-axis contraction (MXU consumes the "transposed" operand
        # directly); block-diagonal bias restricts attention to the same batch
        # element, reproducing the per-batch bmm exactly.
        s1 = lax.dot_general(gw, e, contract_last,
                             preferred_element_type=jnp.float32) + bias  # (BL, BL)
        s2 = lax.dot_general(ew, g, contract_last,
                             preferred_element_type=jnp.float32) + bias  # (BL, BL)

        # Numerically stable softmax along the last axis; approx reciprocal
        # lands on the otherwise idle EUP slot.
        p1 = jnp.exp(s1 - jnp.max(s1, axis=-1, keepdims=True))
        a1 = p1 * pl.reciprocal(jnp.sum(p1, axis=-1, keepdims=True), approx=True)
        p2 = jnp.exp(s2 - jnp.max(s2, axis=-1, keepdims=True))
        a2 = p2 * pl.reciprocal(jnp.sum(p2, axis=-1, keepdims=True), approx=True)

        # Masked-out (cross-batch) attention weights are exactly 0, so the
        # value matmuls mix rows only within each batch element.
        g_new = jnp.dot(a1, e, preferred_element_type=jnp.float32)     # (BL, D)
        e_new = jnp.dot(a2, g, preferred_element_type=jnp.float32)     # (BL, D)
        # dropout(p = emo_dp = 0.0) on intermediate layers is identity.
        g, e = g_new, e_new

    # In-kernel torch.cat([G, E], dim=-1).
    out_ref[:, :feat_dim] = g.astype(out_ref.dtype)
    out_ref[:, feat_dim:] = e.astype(out_ref.dtype)


def tsam_fused(gat_h, emo_h, affine1, affine2, *, num_layers):
    """Single fused pallas_call: all layers, whole batch, in-kernel concat."""
    B, L, D = gat_h.shape
    BL = B * L

    # Flatten batch for the kernel; reshape back afterwards (plain XLA, cheap).
    g2 = gat_h.reshape(BL, D)
    e2 = emo_h.reshape(BL, D)

    # Block-diagonal additive mask (constant-folds under jit).
    batch_id = jnp.arange(BL, dtype=jnp.int32) // L
    bias = jnp.where(batch_id[:, None] == batch_id[None, :],
                     jnp.float32(0.0), jnp.float32(_NEG_BIG))

    # Advisory cost estimate for the XLA scheduler.
    flops = num_layers * (4 * BL * D * D + 8 * BL * BL * D)
    transcendentals = num_layers * (2 * BL * BL + 2 * BL)
    bytes_accessed = 4 * (2 * BL * D + 2 * D * D + BL * BL + BL * 2 * D)

    kernel = functools.partial(_tsam_fused_kernel,
                               num_layers=num_layers, feat_dim=D)
    vmem_spec = pl.BlockSpec(memory_space=pltpu.MemorySpace.VMEM)

    out2 = pl.pallas_call(
        kernel,
        out_shape=jax.ShapeDtypeStruct((BL, 2 * D), gat_h.dtype),
        in_specs=[vmem_spec] * 5,
        out_specs=vmem_spec,
        cost_estimate=pl.CostEstimate(
            flops=flops,
            transcendentals=transcendentals,
            bytes_accessed=bytes_accessed),
    )(g2, e2, affine1, affine2, bias)

    return out2.reshape(B, L, 2 * D)


class TSAMConfig:
    tsam_layer_num = 2
    use_gat = True
    use_emo_type = 'emotion'   # != 'none'
    use_interaction = True
    feat_dim = 32
    emo_dp = 0.0               # dropout p=0 -> identity (deterministic)


def tsam_forward(configs, params, win_utters_h, window_len_b, emotion_embs,
                 emotion_reps, adj_b, adj_same_b, adj_diff_b):
    # NOTE: the reference's `assert max(window_len_b) == curr_max_win_len` is a
    # host-side shape sanity check; doing it here would force a device->host
    # sync in the hot path, so it is intentionally omitted.
    del window_len_b, emotion_embs, emotion_reps, adj_b, adj_same_b, adj_diff_b

    if configs.use_gat and configs.use_emo_type != 'none' and configs.use_interaction:
        # Both layers (identity TSAMLayer + interaction) and the final concat
        # are fused into one pallas_call.
        return tsam_fused(win_utters_h, win_utters_h,
                          params["affine1"], params["affine2"],
                          num_layers=configs.tsam_layer_num)

    # Non-interaction branches: TSAMLayer is an identity stub, so the streams
    # are pass-throughs of win_utters_h.
    outputs_gat = win_utters_h
    outputs_emo = win_utters_h
    if configs.use_gat and configs.use_emo_type != 'none':
        return jnp.concatenate([outputs_gat, outputs_emo], axis=-1)
    elif (not configs.use_gat) and configs.use_emo_type != 'none':
        return outputs_emo
    else:
        return outputs_gat


def _reference_forward(x, w1, w2, num_layers):
    """Pure-JAX reference of the interaction stack + concat (for validation)."""
    g = e = x.astype(jnp.float32)
    for _ in range(num_layers):
        s1 = jnp.einsum('bqd,bkd->bqk', jnp.einsum('bqd,dk->bqk', g, w1), e)
        s2 = jnp.einsum('bqd,bkd->bqk', jnp.einsum('bqd,dk->bqk', e, w2), g)
        a1 = jax.nn.softmax(s1, axis=-1)
        a2 = jax.nn.softmax(s2, axis=-1)
        g, e = jnp.einsum('bqk,bkd->bqd', a1, e), jnp.einsum('bqk,bkd->bqd', a2, g)
    return jnp.concatenate([g, e], axis=-1)


if __name__ == "__main__":
    configs = TSAMConfig()
    B, L, D = 2, 8, configs.feat_dim

    key = jax.random.PRNGKey(0)
    k_x, k_w1, k_w2, k_embs, k_reps = jax.random.split(key, 5)

    # inputs
    win_utters_h = jax.random.normal(k_x, (B, L, D), dtype=jnp.float32)
    window_len_b = jnp.full((B,), L, dtype=jnp.int32)
    emotion_embs = jax.random.normal(k_embs, (7, D), dtype=jnp.float32)
    emotion_reps = jax.random.normal(k_reps, (B, L, D), dtype=jnp.float32)
    adj_b = jnp.ones((B, L, L), dtype=jnp.float32)
    adj_same_b = jnp.ones((B, L, L), dtype=jnp.float32)
    adj_diff_b = jnp.zeros((B, L, L), dtype=jnp.float32)

    # deterministic parameter init (module declares uninitialized nn.Parameter;
    # we use a small xavier-like normal init).
    scale = 1.0 / jnp.sqrt(jnp.float32(D))
    params = {
        "affine1": jax.random.normal(k_w1, (D, D), dtype=jnp.float32) * scale,
        "affine2": jax.random.normal(k_w2, (D, D), dtype=jnp.float32) * scale,
    }

    out = tsam_forward(configs, params, win_utters_h, window_len_b,
                       emotion_embs, emotion_reps, adj_b, adj_same_b, adj_diff_b)
    out = jax.block_until_ready(out)
    assert out.shape == (B, L, 2 * D), out.shape

    # Validate against a pure-JAX reference (loose tolerance covers the
    # EUP approx-reciprocal in the softmax normalization).
    ref = jax.block_until_ready(
        _reference_forward(win_utters_h, params["affine1"], params["affine2"],
                           configs.tsam_layer_num))
    assert bool(jnp.allclose(out, ref, atol=2e-2, rtol=2e-2)), "mismatch vs reference"

    print("KERNEL_OK")
</pallas_src>

<mosaic_0001>
module attributes {stable_mosaic.version = 11 : i64} {
  func.func @_tsam_fused_kernel(%arg0: memref<16x32xf32, #tpu.memory_space<vmem>>, %arg1: memref<16x32xf32, #tpu.memory_space<vmem>>, %arg2: memref<32x32xf32, #tpu.memory_space<vmem>>, %arg3: memref<32x32xf32, #tpu.memory_space<vmem>>, %arg4: memref<16x16xf32, #tpu.memory_space<vmem>>, %arg5: memref<16x64xf32, #tpu.memory_space<vmem>>) attributes {dimension_semantics = [], scalar_prefetch = 0 : i64, scratch_operands = 0 : i64, tpu.core_type = #tpu.core_type<tc>} {
    %c0 = arith.constant 0 : index
    %c0_0 = arith.constant 0 : index
    %0 = vector.load %arg0[%c0, %c0_0] : memref<16x32xf32, #tpu.memory_space<vmem>>, vector<16x32xf32>
    %c0_1 = arith.constant 0 : index
    %c0_2 = arith.constant 0 : index
    %1 = vector.load %arg1[%c0_1, %c0_2] : memref<16x32xf32, #tpu.memory_space<vmem>>, vector<16x32xf32>
    %c0_3 = arith.constant 0 : index
    %c0_4 = arith.constant 0 : index
    %2 = vector.load %arg2[%c0_3, %c0_4] : memref<32x32xf32, #tpu.memory_space<vmem>>, vector<32x32xf32>
    %c0_5 = arith.constant 0 : index
    %c0_6 = arith.constant 0 : index
    %3 = vector.load %arg3[%c0_5, %c0_6] : memref<32x32xf32, #tpu.memory_space<vmem>>, vector<32x32xf32>
    %c0_7 = arith.constant 0 : index
    %c0_8 = arith.constant 0 : index
    %4 = vector.load %arg4[%c0_7, %c0_8] : memref<16x16xf32, #tpu.memory_space<vmem>>, vector<16x16xf32>
    %cst = arith.constant dense<0.000000e+00> : vector<16x32xf32>
    %5 = tpu.matmul %0, %2, %cst {dimension_numbers = #tpu.dot_dimension_numbers<[1], [0], [0], [1], [0, 0, 1, 1], [], []>} : vector<16x32xf32>, vector<32x32xf32>, vector<16x32xf32> -> vector<16x32xf32>
    %cst_9 = arith.constant dense<0.000000e+00> : vector<16x32xf32>
    %6 = tpu.matmul %1, %3, %cst_9 {dimension_numbers = #tpu.dot_dimension_numbers<[1], [0], [0], [1], [0, 0, 1, 1], [], []>} : vector<16x32xf32>, vector<32x32xf32>, vector<16x32xf32> -> vector<16x32xf32>
    %cst_10 = arith.constant dense<0.000000e+00> : vector<16x16xf32>
    %7 = tpu.matmul %5, %1, %cst_10 {dimension_numbers = #tpu.dot_dimension_numbers<[1], [1], [0], [0], [0, 0, 1, 0], [], []>} : vector<16x32xf32>, vector<16x32xf32>, vector<16x16xf32> -> vector<16x16xf32>
    %8 = arith.addf %7, %4 : vector<16x16xf32>
    %cst_11 = arith.constant dense<0.000000e+00> : vector<16x16xf32>
    %9 = tpu.matmul %6, %0, %cst_11 {dimension_numbers = #tpu.dot_dimension_numbers<[1], [1], [0], [0], [0, 0, 1, 0], [], []>} : vector<16x32xf32>, vector<16x32xf32>, vector<16x16xf32> -> vector<16x16xf32>
    %10 = arith.addf %9, %4 : vector<16x16xf32>
    %cst_12 = arith.constant dense<0xFF800000> : vector<16xf32>
    %11 = vector.multi_reduction <maximumf>, %8, %cst_12 [1] : vector<16x16xf32> to vector<16xf32>
    %12 = vector.shape_cast %11 : vector<16xf32> to vector<16x1xf32>
    %13 = vector.broadcast %12 : vector<16x1xf32> to vector<16x16xf32>
    %14 = arith.subf %8, %13 : vector<16x16xf32>
    %15 = math.exp %14 : vector<16x16xf32>
    %cst_13 = arith.constant dense<0.000000e+00> : vector<16xf32>
    %16 = vector.multi_reduction <add>, %15, %cst_13 [1] : vector<16x16xf32> to vector<16xf32>
    %17 = vector.shape_cast %16 : vector<16xf32> to vector<16x1xf32>
    %18 = tpu.reciprocal %17 {approx = true} : vector<16x1xf32> -> vector<16x1xf32>
    %19 = vector.broadcast %18 : vector<16x1xf32> to vector<16x16xf32>
    %20 = arith.mulf %15, %19 : vector<16x16xf32>
    %cst_14 = arith.constant dense<0xFF800000> : vector<16xf32>
    %21 = vector.multi_reduction <maximumf>, %10, %cst_14 [1] : vector<16x16xf32> to vector<16xf32>
    %22 = vector.shape_cast %21 : vector<16xf32> to vector<16x1xf32>
    %23 = vector.broadcast %22 : vector<16x1xf32> to vector<16x16xf32>
    %24 = arith.subf %10, %23 : vector<16x16xf32>
    %25 = math.exp %24 : vector<16x16xf32>
    %cst_15 = arith.constant dense<0.000000e+00> : vector<16xf32>
    %26 = vector.multi_reduction <add>, %25, %cst_15 [1] : vector<16x16xf32> to vector<16xf32>
    %27 = vector.shape_cast %26 : vector<16xf32> to vector<16x1xf32>
    %28 = tpu.reciprocal %27 {approx = true} : vector<16x1xf32> -> vector<16x1xf32>
    %29 = vector.broadcast %28 : vector<16x1xf32> to vector<16x16xf32>
    %30 = arith.mulf %25, %29 : vector<16x16xf32>
    %cst_16 = arith.constant dense<0.000000e+00> : vector<16x32xf32>
    %31 = tpu.matmul %20, %1, %cst_16 {dimension_numbers = #tpu.dot_dimension_numbers<[1], [0], [0], [1], [0, 0, 1, 1], [], []>} : vector<16x16xf32>, vector<16x32xf32>, vector<16x32xf32> -> vector<16x32xf32>
    %cst_17 = arith.constant dense<0.000000e+00> : vector<16x32xf32>
    %32 = tpu.matmul %30, %0, %cst_17 {dimension_numbers = #tpu.dot_dimension_numbers<[1], [0], [0], [1], [0, 0, 1, 1], [], []>} : vector<16x16xf32>, vector<16x32xf32>, vector<16x32xf32> -> vector<16x32xf32>
    %cst_18 = arith.constant dense<0.000000e+00> : vector<16x32xf32>
    %33 = tpu.matmul %31, %2, %cst_18 {dimension_numbers = #tpu.dot_dimension_numbers<[1], [0], [0], [1], [0, 0, 1, 1], [], []>} : vector<16x32xf32>, vector<32x32xf32>, vector<16x32xf32> -> vector<16x32xf32>
    %cst_19 = arith.constant dense<0.000000e+00> : vector<16x32xf32>
    %34 = tpu.matmul %32, %3, %cst_19 {dimension_numbers = #tpu.dot_dimension_numbers<[1], [0], [0], [1], [0, 0, 1, 1], [], []>} : vector<16x32xf32>, vector<32x32xf32>, vector<16x32xf32> -> vector<16x32xf32>
    %cst_20 = arith.constant dense<0.000000e+00> : vector<16x16xf32>
    %35 = tpu.matmul %33, %32, %cst_20 {dimension_numbers = #tpu.dot_dimension_numbers<[1], [1], [0], [0], [0, 0, 1, 0], [], []>} : vector<16x32xf32>, vector<16x32xf32>, vector<16x16xf32> -> vector<16x16xf32>
    %36 = arith.addf %35, %4 : vector<16x16xf32>
    %cst_21 = arith.constant dense<0.000000e+00> : vector<16x16xf32>
    %37 = tpu.matmul %34, %31, %cst_21 {dimension_numbers = #tpu.dot_dimension_numbers<[1], [1], [0], [0], [0, 0, 1, 0], [], []>} : vector<16x32xf32>, vector<16x32xf32>, vector<16x16xf32> -> vector<16x16xf32>
    %38 = arith.addf %37, %4 : vector<16x16xf32>
    %cst_22 = arith.constant dense<0xFF800000> : vector<16xf32>
    %39 = vector.multi_reduction <maximumf>, %36, %cst_22 [1] : vector<16x16xf32> to vector<16xf32>
    %40 = vector.shape_cast %39 : vector<16xf32> to vector<16x1xf32>
    %41 = vector.broadcast %40 : vector<16x1xf32> to vector<16x16xf32>
    %42 = arith.subf %36, %41 : vector<16x16xf32>
    %43 = math.exp %42 : vector<16x16xf32>
    %cst_23 = arith.constant dense<0.000000e+00> : vector<16xf32>
    %44 = vector.multi_reduction <add>, %43, %cst_23 [1] : vector<16x16xf32> to vector<16xf32>
    %45 = vector.shape_cast %44 : vector<16xf32> to vector<16x1xf32>
    %46 = tpu.reciprocal %45 {approx = true} : vector<16x1xf32> -> vector<16x1xf32>
    %47 = vector.broadcast %46 : vector<16x1xf32> to vector<16x16xf32>
    %48 = arith.mulf %43, %47 : vector<16x16xf32>
    %cst_24 = arith.constant dense<0xFF800000> : vector<16xf32>
    %49 = vector.multi_reduction <maximumf>, %38, %cst_24 [1] : vector<16x16xf32> to vector<16xf32>
    %50 = vector.shape_cast %49 : vector<16xf32> to vector<16x1xf32>
    %51 = vector.broadcast %50 : vector<16x1xf32> to vector<16x16xf32>
    %52 = arith.subf %38, %51 : vector<16x16xf32>
    %53 = math.exp %52 : vector<16x16xf32>
    %cst_25 = arith.constant dense<0.000000e+00> : vector<16xf32>
    %54 = vector.multi_reduction <add>, %53, %cst_25 [1] : vector<16x16xf32> to vector<16xf32>
    %55 = vector.shape_cast %54 : vector<16xf32> to vector<16x1xf32>
    %56 = tpu.reciprocal %55 {approx = true} : vector<16x1xf32> -> vector<16x1xf32>
    %57 = vector.broadcast %56 : vector<16x1xf32> to vector<16x16xf32>
    %58 = arith.mulf %53, %57 : vector<16x16xf32>
    %cst_26 = arith.constant dense<0.000000e+00> : vector<16x32xf32>
    %59 = tpu.matmul %48, %32, %cst_26 {dimension_numbers = #tpu.dot_dimension_numbers<[1], [0], [0], [1], [0, 0, 1, 1], [], []>} : vector<16x16xf32>, vector<16x32xf32>, vector<16x32xf32> -> vector<16x32xf32>
    %cst_27 = arith.constant dense<0.000000e+00> : vector<16x32xf32>
    %60 = tpu.matmul %58, %31, %cst_27 {dimension_numbers = #tpu.dot_dimension_numbers<[1], [0], [0], [1], [0, 0, 1, 1], [], []>} : vector<16x16xf32>, vector<16x32xf32>, vector<16x32xf32> -> vector<16x32xf32>
    %c0_28 = arith.constant 0 : index
    %c0_29 = arith.constant 0 : index
    %61 = vector.load %arg5[%c0_28, %c0_29] : memref<16x64xf32, #tpu.memory_space<vmem>>, vector<16x32xf32>
    tpu.vector_store %arg5[%c0_28, %c0_29], %59 {strides = array<i32>} : memref<16x64xf32, #tpu.memory_space<vmem>>, vector<16x32xf32>,
    %c0_30 = arith.constant 0 : index
    %c32 = arith.constant 32 : index
    %62 = vector.load %arg5[%c0_30, %c32] : memref<16x64xf32, #tpu.memory_space<vmem>>, vector<16x32xf32>
    tpu.vector_store %arg5[%c0_30, %c32], %60 {strides = array<i32>} : memref<16x64xf32, #tpu.memory_space<vmem>>, vector<16x32xf32>,
    return
  }
}

</mosaic_0001>

<bundles_post_ra>
// kernel: tpu_custom_call.1
= control target key start
LH: loop header
LB: loop body
LE: loop exit
PB: predicated region body
PF: predicated region fallthrough
CT: control target
= control target key end

     0   :  { %10 = vsyncpa [#allocation3], 0  ;;  %s1881_s0 = inlined_call_operand.hbm [shape: f32[16,32], index: 0, kind: input, shape index: {}]   ;;  %s1882_s1 = inlined_call_operand.hbm [shape: f32[16,32], index: 1, kind: input, shape index: {}]   ;;  %s1883_s2 = inlined_call_operand.hbm [shape: f32[32,32], index: 2, kind: input, shape index: {}]   ;;  %s1884_s3 = inlined_call_operand.hbm [shape: f32[32,32], index: 3, kind: input, shape index: {}]   ;;  %s1885_s4 = inlined_call_operand.hbm [shape: f32[16,16], index: 4, kind: input, shape index: {}]   ;;  %s1886_s5 = inlined_call_operand.hbm [shape: f32[16,64], index: 5, kind: output, shape index: {}]  }
   0x1   :  { %11 = vsyncpa [#allocation6], 0 }
   0x2   :  { %12 = vsyncpa [#allocation9], 0 }
   0x3   :  { %13 = vsyncpa [#allocation4], 0  ;;  %s1638_s18 = smov [#allocation5]   ;;  %s1639_s20 = smov [#allocation8]  }
   0x4   :  { %s31_s19 = sshll.u32 %s1638_s18, 4  ;;  %s55_s21 = sshll.u32 %s1639_s20, 4  ;;  %s32_s19 = int_to_ptr.vmem [resolvable:$true] %s31_s19  ;;  %s1677_s21 = int_to_ptr.vmem [resolvable:$true] %s55_s21 }
   0x5   :  { %s1498_s24 = scalar_lea.hbm %s1882_s1, 256 }
   0x6   :  { %p1499_p0 = scmp.ne.s32.totalorder %s1882_s1, %s1498_s24  ;;  %p1502_p1 = scmp.lt.u32.totalorder %s1498_s24, %s1882_s1 }
   0x8   :  { %p1504_p2 = pnand %p1502_p1, %p1499_p0 }
   0xa   :  { %1507 = shalt.err (!%p1504_p2)
}
   0xb   :  { %s1508_s29 = scalar_lea.vmem %s32_s19, 256  ;;  %p1513_p4 = scmp.lt.s32.totalorder %s32_s19, %s32_s19 }
   0xc   :  { %p1509_p3 = scmp.ne.s32.totalorder %s32_s19, %s1508_s29  ;;  %p1514_p5 = scmp.lt.s32.totalorder %s1508_s29, %s1508_s29 }
   0xe   :  { %p1515_p6 = por %p1514_p5, %p1513_p4 }
  0x10   :  { %p1516_p7 = pnand %p1515_p6, %p1509_p3 }
  0x12   :  { %1519 = shalt.err (!%p1516_p7)
}
  0x13   :  { %s1640_s30 = smov 128   ;;  %s1641_s6 = smov 8  }
  0x14   :  { %37 = dma.hbm_to_vmem [thread:$0]  %s1882_s1, 256, %s32_s19, [#allocation6], %s1640_s30, %s1640_s30, %s1641_s6  }
  0x15   :  { %s1520_s11 = scalar_lea.hbm %s1884_s3, 512 }
  0x16   :  { %p1521_p8 = scmp.ne.s32.totalorder %s1884_s3, %s1520_s11  ;;  %p1524_p9 = scmp.lt.u32.totalorder %s1520_s11, %s1884_s3 }
  0x18   :  { %p1526_p10 = pnand %p1524_p9, %p1521_p8 }
  0x1a   :  { %1529 = shalt.err (!%p1526_p10)
}
  0x1b   :  { %s1530_s16 = scalar_lea.vmem %s1677_s21, 512  ;;  %p1535_p12 = scmp.lt.s32.totalorder %s1677_s21, %s1677_s21 }
  0x1c   :  { %p1531_p11 = scmp.ne.s32.totalorder %s1677_s21, %s1530_s16  ;;  %p1536_p13 = scmp.lt.s32.totalorder %s1530_s16, %s1530_s16 }
  0x1e   :  { %p1537_p0 = por %p1536_p13, %p1535_p12 }
  0x20   :  { %p1538_p1 = pnand %p1537_p0, %p1531_p11 }
  0x22   :  { %1541 = shalt.err (!%p1538_p1)
}
  0x23   :  { %61 = dma.hbm_to_vmem [thread:$0]  %s1884_s3, 512, %s1677_s21, [#allocation9], %s1640_s30, %s1640_s30, %s1641_s6  }
  0x24   :  { %s1642_s18 = smov [#allocation2]   ;;  %s1643_s20 = smov [#allocation7]  }
  0x25   :  { %s19_s19 = sshll.u32 %s1642_s18, 4  ;;  %s43_s22 = sshll.u32 %s1643_s20, 4  ;;  %s20_s19 = int_to_ptr.vmem [resolvable:$true] %s19_s19  ;;  %s1714_s22 = int_to_ptr.vmem [resolvable:$true] %s43_s22 }
  0x26   :  { %s1542_s25 = scalar_lea.hbm %s1881_s0, 256 }
  0x27   :  { %p1543_p2 = scmp.ne.s32.totalorder %s1881_s0, %s1542_s25  ;;  %p1546_p3 = scmp.lt.u32.totalorder %s1542_s25, %s1881_s0 }
  0x29   :  { %p1548_p4 = pnand %p1546_p3, %p1543_p2 }
  0x2b   :  { %1551 = shalt.err (!%p1548_p4)
}
  0x2c   :  { %s1552_s3 = scalar_lea.vmem %s20_s19, 256  ;;  %p1557_p6 = scmp.lt.s32.totalorder %s20_s19, %s20_s19 }
  0x2d   :  { %p1553_p5 = scmp.ne.s32.totalorder %s20_s19, %s1552_s3  ;;  %p1558_p7 = scmp.lt.s32.totalorder %s1552_s3, %s1552_s3 }
  0x2f   :  { %p1559_p8 = por %p1558_p7, %p1557_p6 }
  0x31   :  { %p1560_p9 = pnand %p1559_p8, %p1553_p5 }
  0x33   :  { %1563 = shalt.err (!%p1560_p9)
}
  0x34   :  { %25 = dma.hbm_to_vmem [thread:$0]  %s1881_s0, 256, %s20_s19, [#allocation3], %s1640_s30, %s1640_s30, %s1641_s6  }
  0x35   :  { %s1564_s10 = scalar_lea.hbm %s1883_s2, 512 }
  0x36   :  { %p1565_p10 = scmp.ne.s32.totalorder %s1883_s2, %s1564_s10  ;;  %p1568_p11 = scmp.lt.u32.totalorder %s1564_s10, %s1883_s2 }
  0x38   :  { %p1570_p12 = pnand %p1568_p11, %p1565_p10 }
  0x3a   :  { %1573 = shalt.err (!%p1570_p12)
}
  0x3b   :  { %s1574_s15 = scalar_lea.vmem %s1714_s22, 512  ;;  %p1579_p0 = scmp.lt.s32.totalorder %s1714_s22, %s1714_s22 }
  0x3c   :  { %p1575_p13 = scmp.ne.s32.totalorder %s1714_s22, %s1574_s15  ;;  %p1580_p1 = scmp.lt.s32.totalorder %s1574_s15, %s1574_s15 }
  0x3e   :  { %p1581_p2 = por %p1580_p1, %p1579_p0 }
  0x40   :  { %p1582_p3 = pnand %p1581_p2, %p1575_p13 }
  0x42   :  { %1585 = shalt.err (!%p1582_p3)
}
  0x43   :  { %49 = dma.hbm_to_vmem [thread:$0]  %s1883_s2, 512, %s1714_s22, [#allocation6], %s1640_s30, %s1640_s30, %s1641_s6  }
  0x44   :  { %s1644_s1 = smov [#allocation10]   ;;  %s1586_s20 = scalar_lea.hbm %s1885_s4, 256 }
  0x45   :  { %s67_s17 = sshll.u32 %s1644_s1, 4  ;;  %p1587_p4 = scmp.ne.s32.totalorder %s1885_s4, %s1586_s20  ;;  %s68_s17 = int_to_ptr.vmem [resolvable:$true] %s67_s17 }
  0x46   :  { %p1590_p5 = scmp.lt.u32.totalorder %s1586_s20, %s1885_s4 }
  0x48   :  { %p1592_p6 = pnand %p1590_p5, %p1587_p4 }
  0x4a   :  { %1595 = shalt.err (!%p1592_p6)
}
  0x4b   :  { %s1596_s27 = scalar_lea.vmem %s68_s17, 256  ;;  %p1601_p8 = scmp.lt.s32.totalorder %s68_s17, %s68_s17 }
  0x4c   :  { %p1597_p7 = scmp.ne.s32.totalorder %s68_s17, %s1596_s27  ;;  %p1602_p9 = scmp.lt.s32.totalorder %s1596_s27, %s1596_s27 }
  0x4e   :  { %p1603_p10 = por %p1602_p9, %p1601_p8 }
  0x50   :  { %p1604_p11 = pnand %p1603_p10, %p1597_p7 }
  0x52   :  { %1607 = shalt.err (!%p1604_p11)
}
  0x53   :  { %73 = dma.hbm_to_vmem [thread:$0]  %s1885_s4, 256, %s68_s17, [#allocation9], %s1640_s30, %s1640_s30, %s1641_s6  }
  0x54   :  { %1630 = dma.done.wait [#allocation3], 256  }
  0x55   :  { %1631 = vsyncadd [#allocation3], 4294967040 }
  0x56   :  { %1632 = dma.done.wait [#allocation6], 768  }
  0x57   :  { %1633 = vsyncadd [#allocation6], 4294966528 }
  0x58   :  { %1634 = dma.done.wait [#allocation9], 768  }
  0x59   :  { %1635 = vsyncadd [#allocation9], 4294966528  ;;  %v93_v0 = vld [vmem:[#allocation7] sm:$0xff]  ;;  %v94_v1 = vld [vmem:[#allocation7 + $0x8] sm:$0xff]  ;;  %vm103_vm0 = vcmask 261120   ;;  %vm428_vm2 = vcmask 130048  }
  0x5a   :  { %v97_v2 = vld [vmem:[#allocation8] sm:$0xff]  ;;  %v1766_v3 = vpack.c.bf16 %v94_v1, %v93_v0  ;;  %v98_v4 = vld [vmem:[#allocation8 + $0x8] sm:$0xff]  ;;  %v95_v5 = vld [vmem:[#allocation7 + $0x10] sm:$0xff]  ;;  %s1645_s4 = smov 32   ;;  %s1646_s28 = smov [#allocation11]   ;;  %vm1175_vm3 = vcmask 523520  }
  0x5b   :  { %v96_v6 = vld [vmem:[#allocation7 + $0x18] sm:$0xff]  ;;  %v1768_v7 = vpack.c.bf16 %v98_v4, %v97_v2  ;;  %v99_v9 = vld [vmem:[#allocation8 + $0x10] sm:$0xff]  ;;  %v89_v11 = vld [vmem:[#allocation2] sm:$0xff]  ;;  %s1183_s29 = sshll.u32 %s1646_s28, 4  ;;  %s1184_s29 = int_to_ptr.vmem [resolvable:$true] %s1183_s29 }
  0x5c   :  { %v1770_v8 = vpack.c.bf16 %v96_v6, %v95_v5  ;;  %v100_v10 = vld [vmem:[#allocation8 + $0x18] sm:$0xff]  ;;  %1386 = vmatprep.subr.bf16.mxu0 %v1766_v3  ;;  %1293 = vmatprep.mubr.msk.f32.mxu0 %vm103_vm0, %v89_v11  ;;  %v91_v13 = vld [vmem:[#allocation5] sm:$0xff]  ;;  %v90_v15 = vld [vmem:[#allocation2 + $0x8] sm:$0xff]  ;;  %s1608_s3 = scalar_lea.vmem %s1184_s29, 256  ;;  %p1613_p13 = scmp.lt.s32.totalorder %s1184_s29, %s1184_s29 }
  0x5d   :  { %v1773_v12 = vpack.c.bf16 %v100_v10, %v99_v9  ;;  %1394 = vmatprep.subr.bf16.mxu1 %v1768_v7  ;;  %1388 = vmatpush3.bf16.msra.mxu0 %v1766_v3  ;;  %v92_v14 = vld [vmem:[#allocation5 + $0x8] sm:$0xff]  ;;  %v1407_v17 = vpack.c.bf16 %v90_v15, %v89_v11  ;;  %vm1784_vm1 = vmpackc.low %vm103_vm0, %vm103_vm0  ;;  %v1806_v23 = vld [vmem:[#allocation10] sm:$0xff]  ;;  %p1609_p12 = scmp.ne.s32.totalorder %s1184_s29, %s1608_s3  ;;  %p1614_p0 = scmp.lt.s32.totalorder %s1608_s3, %s1608_s3 }
  0x5e   :  { %1396 = vmatpush3.bf16.msra.mxu1 %v1768_v7  ;;  %1390 = vmatprep.subr.bf16.mxu0 %v1770_v8  ;;  %v1401_v16 = vpack.c.bf16 %v92_v14, %v91_v13  ;;  %v1808_v25 = vld [vmem:[#allocation10 + $0x8] sm:$0xff] }
  0x5f   :  { %1398 = vmatprep.subr.bf16.mxu1 %v1773_v12  ;;  %1304 = vmatprep.mubr.msk.f32.mxu1 %vm103_vm0, %v91_v13  ;;  %p1615_p1 = por %p1614_p0, %p1613_p13 }
  0x61   :  { %1392 = vmatpush3.bf16.msra.mxu0 %v1770_v8  ;;  %p1616_p2 = pnand %p1615_p1, %p1609_p12 }
  0x62   :  { %1400 = vmatpush3.bf16.msra.mxu1 %v1773_v12  ;;  %1403 = vmatprep.subr.msk.bf16.mxu0 %vm1784_vm1, %v1401_v16 }
  0x63   :  { %1409 = vmatprep.subr.msk.bf16.mxu1 %vm1784_vm1, %v1407_v17 }
  0x64   :  { %1294 = vmatmul.mubr.msk.f32.vlgmr.msra.gmra.mrb[0].mxu0 %vm103_vm0, %v90_v15 }
  0x65   :  { %1305 = vmatmul.mubr.msk.f32.vlgmr.msra.gmra.mrb[0].mxu1 %vm103_vm0, %v92_v14 }
  0x6a   :  { %1406 = vmatpush3.bf16.xpose.msk.msra.mxu0 %vm1784_vm1, %v1401_v16 }
  0x6b   :  { %1412 = vmatpush3.bf16.xpose.msk.msra.mxu1 %vm1784_vm1, %v1407_v17  ;;  %1414 = vmatprep.subr.bf16.mxu0 %v1401_v16 }
  0x6c   :  { %1418 = vmatprep.subr.bf16.mxu1 %v1407_v17 }
 0x137   :  { %v1295_v19 = vpop.f32.mrb[0].mxu0 }
 0x138   :  { %v1306_v20 = vpop.f32.mrb[0].mxu1  ;;  %v176_v21 = vpop.f32.mrb[1].mxu0 }
 0x139   :  { %v257_v22 = vpop.f32.mrb[1].mxu1  ;;  %1311 = vmatprep.mubr.msk.f32.mxu0 %vm103_vm0, %v176_v21 }
 0x13a   :  { %1318 = vmatprep.mubr.msk.f32.mxu1 %vm103_vm0, %v257_v22  ;;  %1312 = vmatmul.mubr.msk.f32.vlgmr.msra.gmra.mrb[2].mxu0 %vm103_vm0, %v1295_v19 }
 0x13b   :  { %1319 = vmatmul.mubr.msk.f32.vlgmr.msra.gmra.mrb[2].mxu1 %vm103_vm0, %v1306_v20  ;;  %1416 = vmatpush3.bf16.msra.mxu0 %v1401_v16 }
 0x13c   :  { %1420 = vmatpush3.bf16.msra.mxu1 %v1407_v17  ;;  %1422 = vmatprep.subr.bf16.mxu0 %v1766_v3 }
 0x13d   :  { %1430 = vmatprep.subr.bf16.mxu1 %v1768_v7 }
 0x20d   :  { %v1313_v24 = vpop.f32.mrb[2].mxu0 }
 0x20e   :  { %v1320_v26 = vpop.f32.mrb[2].mxu1  ;;  %v338_v27 = vpop.f32.mrb[3].mxu0  ;;  %v344_v28 = vadd.f32 %v1313_v24, %v1808_v25 }
 0x20f   :  { %v339_v29 = vadd.f32 %v338_v27, %v1806_v23  ;;  %v419_v30 = vpop.f32.mrb[3].mxu1  ;;  %v425_v33 = vadd.f32 %v1320_v26, %v1808_v25 }
 0x210   :  { %v420_v31 = vadd.f32 %v419_v30, %v1806_v23  ;;  %v432_v35 = vsel %vm428_vm2, %v344_v28, -inf }
 0x211   :  { %v429_v32 = vsel %vm428_vm2, %v339_v29, -inf  ;;  %v454_v36 = vsel %vm428_vm2, %v425_v33, -inf }
 0x212   :  { %v451_v34 = vsel %vm428_vm2, %v420_v31, -inf  ;;  %430 = vmax.xlane.f32.xlu1 %v429_v32 }
 0x213   :  { %452 = vmax.xlane.f32.xlu0 %v451_v34 }
 0x216   :  { %433 = vmax.xlane.f32.xlu1 %v432_v35 }
 0x217   :  { %455 = vmax.xlane.f32.xlu0 %v454_v36 }
 0x29f   :  { %v431_v37 = vpop.xlane.xlu1 %430 }
 0x2a0   :  { %v453_v38 = vpop.xlane.xlu0 %452  ;;  %v435_v39 = vsub.f32 %v339_v29, %v431_v37 }
 0x2a1   :  { %v457_v40 = vsub.f32 %v420_v31, %v453_v38 }
 0x2a2   :  { %v437_v42 = vmul.f32 1.442695, %v435_v39 }
 0x2a3   :  { %v459_v41 = vmul.f32 1.442695, %v457_v40  ;;  %v434_v43 = vpop.xlane.xlu1 %433 }
 0x2a4   :  { %v456_v44 = vpop.xlane.xlu0 %455  ;;  %v436_v45 = vsub.f32 %v344_v28, %v434_v43 }
 0x2a5   :  { %1466 = vpow2.f32 %v459_v41  ;;  %v458_v46 = vsub.f32 %v425_v33, %v456_v44 }
 0x2a6   :  { %1468 = vpow2.f32 %v437_v42  ;;  %v439_v48 = vmul.f32 1.442695, %v436_v45 }
 0x2a7   :  { %v461_v47 = vmul.f32 1.442695, %v458_v46 }
 0x2a9   :  { %1470 = vpow2.f32 %v461_v47 }
 0x2aa   :  { %1472 = vpow2.f32 %v439_v48 }
 0x2af   :  { %v1467_v49 = vpop.eup %1466 }
 0x2b0   :  { %v463_v50 = vsel %vm428_vm2, %v1467_v49, 0.0  ;;  %v1469_v51 = vpop.eup %1468 }
 0x2b1   :  { %464 = vadd.xlane.f32.xlu0 %v463_v50  ;;  %v441_v54 = vsel %vm428_vm2, %v1469_v51, 0.0 }
 0x2b3   :  { %v1471_v52 = vpop.eup %1470 }
 0x2b4   :  { %v466_v53 = vsel %vm428_vm2, %v1471_v52, 0.0  ;;  %v1473_v55 = vpop.eup %1472 }
 0x2b5   :  { %467 = vadd.xlane.f32.xlu1 %v466_v53  ;;  %442 = vadd.xlane.f32.xlu0 %v441_v54  ;;  %v444_v56 = vsel %vm428_vm2, %v1473_v55, 0.0 }
 0x2b9   :  { %445 = vadd.xlane.f32.xlu1 %v444_v56 }
 0x33e   :  { %v465_v57 = vpop.xlane.xlu0 %464 }
 0x33f   :  { %1474 = vrcp.f32 %v465_v57 }
 0x342   :  { %v443_v58 = vpop.xlane.xlu0 %442  ;;  %v468_v59 = vpop.xlane.xlu1 %467 }
 0x343   :  { %1476 = vrcp.f32 %v443_v58 }
 0x344   :  { %1478 = vrcp.f32 %v468_v59 }
 0x346   :  { %v446_v60 = vpop.xlane.xlu1 %445 }
 0x347   :  { %1480 = vrcp.f32 %v446_v60 }
 0x349   :  { %v1475_v61 = vpop.eup %1474 }
 0x34a   :  { %v471_v62 = vmul.f32 %v1475_v61, %v1467_v49 }
 0x34c   :  { %1332 = vmatprep.mubr.msk.f32.mxu1 %vm428_vm2, %v471_v62 }
 0x34d   :  { %v1477_v63 = vpop.eup %1476 }
 0x34e   :  { %v1479_v0 = vpop.eup %1478  ;;  %v449_v1 = vmul.f32 %v1477_v63, %v1469_v51 }
 0x34f   :  { %v472_v2 = vmul.f32 %v1479_v0, %v1471_v52 }
 0x350   :  { %1325 = vmatprep.mubr.msk.f32.mxu0 %vm428_vm2, %v449_v1 }
 0x351   :  { %v1481_v4 = vpop.eup %1480  ;;  %1333 = vmatmul.mubr.msk.f32.vlgmr.msra.gmra.mrb[4].mxu1 %vm428_vm2, %v472_v2 }
 0x352   :  { %v450_v5 = vmul.f32 %v1481_v4, %v1473_v55  ;;  %1432 = vmatpush3.bf16.msra.mxu1 %v1768_v7 }
 0x353   :  { %1434 = vmatprep.subr.bf16.mxu1 %v1773_v12 }
 0x354   :  { %1326 = vmatmul.mubr.msk.f32.vlgmr.msra.gmra.mrb[4].mxu0 %vm428_vm2, %v450_v5 }
 0x355   :  { %1424 = vmatpush3.bf16.msra.mxu0 %v1766_v3 }
 0x356   :  { %1426 = vmatprep.subr.bf16.mxu0 %v1770_v8  ;;  %1436 = vmatpush3.bf16.msra.mxu1 %v1773_v12 }
 0x359   :  { %1428 = vmatpush3.bf16.msra.mxu0 %v1770_v8 }
 0x424   :  { %v1334_v6 = vpop.f32.mrb[4].mxu1 }
 0x425   :  { %v626_v9 = vpop.f32.mrb[5].mxu1 }
 0x426   :  { %v1437_v10 = vpack.c.bf16 %v1334_v6, %v626_v9  ;;  %1354 = vmatprep.mubr.msk.f32.mxu1 %vm103_vm0, %v626_v9 }
 0x427   :  { %1355 = vmatmul.mubr.msk.f32.vlgmr.msra.gmra.mrb[6].mxu1 %vm103_vm0, %v1334_v6  ;;  %v1327_v7 = vpop.f32.mrb[4].mxu0 }
 0x428   :  { %1439 = vmatprep.subr.msk.bf16.mxu0 %vm1784_vm1, %v1437_v10  ;;  %v545_v11 = vpop.f32.mrb[5].mxu0 }
 0x429   :  { %v1443_v13 = vpack.c.bf16 %v1327_v7, %v545_v11  ;;  %1343 = vmatprep.mubr.msk.f32.mxu0 %vm103_vm0, %v545_v11 }
 0x42a   :  { %1344 = vmatmul.mubr.msk.f32.vlgmr.msra.gmra.mrb[6].mxu0 %vm103_vm0, %v1327_v7 }
 0x42b   :  { %1442 = vmatpush3.bf16.xpose.msk.msra.mxu0 %vm1784_vm1, %v1437_v10  ;;  %1445 = vmatprep.subr.msk.bf16.mxu1 %vm1784_vm1, %v1443_v13 }
 0x42c   :  { %1450 = vmatprep.subr.bf16.mxu0 %v1437_v10  ;;  %1448 = vmatpush3.bf16.xpose.msk.msra.mxu1 %vm1784_vm1, %v1443_v13 }
 0x42d   :  { %1454 = vmatprep.subr.bf16.mxu1 %v1443_v13 }
 0x4fa   :  { %v1356_v3 = vpop.f32.mrb[6].mxu1 }
 0x4fb   :  { %v788_v8 = vpop.f32.mrb[7].mxu1 }
 0x4fc   :  { %1368 = vmatprep.mubr.msk.f32.mxu1 %vm103_vm0, %v788_v8 }
 0x4fd   :  { %1369 = vmatmul.mubr.msk.f32.vlgmr.msra.gmra.mrb[8].mxu1 %vm103_vm0, %v1356_v3  ;;  %v1345_v12 = vpop.f32.mrb[6].mxu0 }
 0x4fe   :  { %1456 = vmatpush3.bf16.msra.mxu1 %v1443_v13  ;;  %v707_v14 = vpop.f32.mrb[7].mxu0 }
 0x4ff   :  { %1361 = vmatprep.mubr.msk.f32.mxu0 %vm103_vm0, %v707_v14 }
 0x500   :  { %1362 = vmatmul.mubr.msk.f32.vlgmr.msra.gmra.mrb[8].mxu0 %vm103_vm0, %v1345_v12 }
 0x501   :  { %1452 = vmatpush3.bf16.msra.mxu0 %v1437_v10 }
 0x5d0   :  { %v1370_v15 = vpop.f32.mrb[8].mxu1 }
 0x5d1   :  { %v956_v16 = vadd.f32 %v1370_v15, %v1808_v25  ;;  %v950_v17 = vpop.f32.mrb[9].mxu1 }
 0x5d2   :  { %v951_v18 = vadd.f32 %v950_v17, %v1806_v23 }
 0x5d3   :  { %v984_v19 = vsel %vm428_vm2, %v956_v16, -inf  ;;  %v1363_v20 = vpop.f32.mrb[8].mxu0 }
 0x5d4   :  { %985 = vmax.xlane.f32.xlu1 %v984_v19  ;;  %v875_v21 = vadd.f32 %v1363_v20, %v1808_v25  ;;  %v981_v22 = vsel %vm428_vm2, %v951_v18, -inf  ;;  %v869_v24 = vpop.f32.mrb[9].mxu0 }
 0x5d5   :  { %982 = vmax.xlane.f32.xlu0 %v981_v22  ;;  %v870_v26 = vadd.f32 %v869_v24, %v1806_v23 }
 0x5d6   :  { %v962_v27 = vsel %vm428_vm2, %v875_v21, -inf }
 0x5d7   :  { %v959_v28 = vsel %vm428_vm2, %v870_v26, -inf }
 0x5d8   :  { %963 = vmax.xlane.f32.xlu1 %v962_v27 }
 0x5d9   :  { %960 = vmax.xlane.f32.xlu0 %v959_v28 }
 0x661   :  { %v986_v29 = vpop.xlane.xlu1 %985 }
 0x662   :  { %v988_v30 = vsub.f32 %v956_v16, %v986_v29  ;;  %v983_v31 = vpop.xlane.xlu0 %982 }
 0x663   :  { %v987_v32 = vsub.f32 %v951_v18, %v983_v31 }
 0x664   :  { %v991_v33 = vmul.f32 1.442695, %v988_v30 }
 0x665   :  { %v989_v34 = vmul.f32 1.442695, %v987_v32  ;;  %v964_v35 = vpop.xlane.xlu1 %963 }
 0x666   :  { %1482 = vpow2.f32 %v991_v33  ;;  %v966_v25 = vsub.f32 %v875_v21, %v964_v35  ;;  %v961_v36 = vpop.xlane.xlu0 %960 }
 0x667   :  { %1484 = vpow2.f32 %v989_v34  ;;  %v965_v37 = vsub.f32 %v870_v26, %v961_v36 }
 0x668   :  { %v969_v38 = vmul.f32 1.442695, %v966_v25 }
 0x669   :  { %v967_v23 = vmul.f32 1.442695, %v965_v37 }
 0x66a   :  { %1486 = vpow2.f32 %v969_v38 }
 0x66b   :  { %1488 = vpow2.f32 %v967_v23 }
 0x670   :  { %v1483_v39 = vpop.eup %1482 }
 0x671   :  { %v1485_v40 = vpop.eup %1484  ;;  %v996_v41 = vsel %vm428_vm2, %v1483_v39, 0.0 }
 0x672   :  { %997 = vadd.xlane.f32.xlu1 %v996_v41  ;;  %v993_v42 = vsel %vm428_vm2, %v1485_v40, 0.0 }
 0x673   :  { %994 = vadd.xlane.f32.xlu0 %v993_v42 }
 0x674   :  { %v1487_v43 = vpop.eup %1486 }
 0x675   :  { %v1489_v44 = vpop.eup %1488  ;;  %v974_v45 = vsel %vm428_vm2, %v1487_v43, 0.0 }
 0x676   :  { %975 = vadd.xlane.f32.xlu1 %v974_v45  ;;  %v971_v46 = vsel %vm428_vm2, %v1489_v44, 0.0 }
 0x677   :  { %972 = vadd.xlane.f32.xlu0 %v971_v46 }
 0x6ff   :  { %v998_v47 = vpop.xlane.xlu1 %997 }
 0x700   :  { %1490 = vrcp.f32 %v998_v47  ;;  %v995_v48 = vpop.xlane.xlu0 %994 }
 0x701   :  { %1492 = vrcp.f32 %v995_v48 }
 0x703   :  { %v976_v49 = vpop.xlane.xlu1 %975 }
 0x704   :  { %1494 = vrcp.f32 %v976_v49  ;;  %v973_v50 = vpop.xlane.xlu0 %972 }
 0x705   :  { %1496 = vrcp.f32 %v973_v50 }
 0x70a   :  { %v1491_v51 = vpop.eup %1490 }
 0x70b   :  { %v1493_v52 = vpop.eup %1492  ;;  %v1002_v54 = vmul.f32 %v1491_v51, %v1483_v39 }
 0x70c   :  { %v1001_v53 = vmul.f32 %v1493_v52, %v1485_v40 }
 0x70e   :  { %v1495_v55 = vpop.eup %1494  ;;  %1382 = vmatprep.mubr.msk.f32.mxu1 %vm428_vm2, %v1001_v53 }
 0x70f   :  { %v1497_v56 = vpop.eup %1496  ;;  %1383 = vmatmul.mubr.msk.f32.vlgmr.msra.gmra.mrb[10].mxu1 %vm428_vm2, %v1002_v54  ;;  %v980_v58 = vmul.f32 %v1495_v55, %v1487_v43 }
 0x710   :  { %v979_v57 = vmul.f32 %v1497_v56, %v1489_v44 }
 0x712   :  { %1375 = vmatprep.mubr.msk.f32.mxu0 %vm428_vm2, %v979_v57 }
 0x713   :  { %1376 = vmatmul.mubr.msk.f32.vlgmr.msra.gmra.mrb[10].mxu0 %vm428_vm2, %v980_v58 }
 0x7e2   :  { %v1384_v59 = vpop.f32.mrb[10].mxu1 }
 0x7e3   :  { %1171 = vrot.lane.b32.xlu1 %v1384_v59, %s1645_s4  ;;  %v1156_v60 = vpop.f32.mrb[11].mxu1 }
 0x7e4   :  { %1169 = vrot.lane.b32.xlu0 %v1156_v60, %s1645_s4 }
 0x7e6   :  { %v1377_v61 = vpop.f32.mrb[10].mxu0 }
 0x7e7   :  { %1166 = vst.msk [vmem:[#allocation11 + $0x8] sm:$0xff] %vm103_vm0, %v1377_v61  ;;  %v1075_v62 = vpop.f32.mrb[11].mxu0 }
 0x7e8   :  { %1165 = vst.msk [vmem:[#allocation11] sm:$0xff] %vm103_vm0, %v1075_v62 }
 0x855   :  { %v1172_v63 = vpop.permute.xlu1 %1171 }
 0x856   :  { %v1170_v0 = vpop.permute.xlu0 %1169  ;;  %1177 = vst.msk [vmem:[#allocation11 + $0x8] sm:$0xff] %vm1175_vm3, %v1172_v63 }
 0x857   :  { %1176 = vst.msk [vmem:[#allocation11] sm:$0xff] %vm1175_vm3, %v1170_v0 }
 0x858   :  { %1619 = shalt.err (!%p1616_p2)
}
 0x859   :  { %s1620_s8 = scalar_lea.hbm %s1886_s5, 256 }
 0x85a   :  { %p1621_p3 = scmp.ne.s32.totalorder %s1886_s5, %s1620_s8  ;;  %p1624_p4 = scmp.lt.u32.totalorder %s1620_s8, %s1886_s5 }
 0x85c   :  { %p1626_p5 = pnand %p1624_p4, %p1621_p3 }
 0x85e   :  { %1629 = shalt.err (!%p1626_p5)
}
 0x85f   :  { %1189 = dma.vmem_to_hbm [thread:$0]  %s1184_s29, 256, %s1886_s5, [#allocation4], %s1640_s30, %s1640_s30, %s1641_s6  }
 0x860   :  { %1636 = dma.done.wait [#allocation4], 256  }
 0x861   :  { %1637 = vsyncadd [#allocation4], 4294967040 }
 0x862   :  { %1193 = vsyncpa [#allocation3], 1 }
 0x863   :  { %1194 = vsyncpa [#allocation6], 1 }
 0x864   :  { %1195 = vsyncpa [#allocation9], 1 }
 0x865   :  { %1196 = vsyncpa [#allocation4], 1 }

</bundles_post_ra>
